<compile_context>
chip_gen: v7x
topology: tpu7x:2x2x1
jax: 0.10.0
libtpu: 0.0.40
codegen_flags: <defaults>
</compile_context>

<pallas_src>
import functools
import math

import jax
import jax.numpy as jnp
from jax.experimental import pallas as pl
from jax.experimental.pallas import tpu as pltpu


_TARGET_TILE_BYTES = 2 << 20        # ~2 MiB per x/out tile
_SPLIT_THRESHOLD_BYTES = 4 << 20    # above this, force >= _MIN_GRID_STEPS grid steps
_SMALL_FAST_PATH_BYTES = 128 << 10  # below this, plain fused XLA add wins
_MIN_GRID_STEPS = 8                 # keeps both v7x TensorCores busy + pipeline warm
_MAX_LIVE_VMEM_BYTES = 40 << 20     # hard guard (double-buffered footprint)


def make_positional_encoding_table(d_model: int, max_len: int = 5000,
                                   dtype=jnp.float32) -> jnp.ndarray:
    """Deterministic buffer identical to the PyTorch __init__ (glue, not hot path).

    Built once at init, pre-cast to the model dtype so the forward never re-casts.
    """
    assert d_model % 2 == 0, "PositionalEncoding requires an even d_model"
    position = jnp.arange(0, max_len, dtype=jnp.float32)[:, None]               # [max_len, 1]
    div_term = jnp.exp(
        jnp.arange(0, d_model, 2, dtype=jnp.float32) * (-math.log(10000.0) / d_model)
    )                                                                            # [d_model/2]
    angles = position * div_term                                                 # [max_len, d_model/2]
    pe = jnp.zeros((max_len, d_model), dtype=jnp.float32)
    pe = pe.at[:, 0::2].set(jnp.sin(angles))
    pe = pe.at[:, 1::2].set(jnp.cos(angles))
    return pe.astype(dtype)                                                      # [max_len, d_model]


def _pe_add_3d_kernel(x_ref, pe_ref, o_ref):
    # x/o: [ts, B, D]; pe: [ts, D] broadcast over batch.  Broadcast cost is free
    # filler (the kernel is HBM-bandwidth bound).
    o_ref[...] = x_ref[...] + pe_ref[...][:, None, :]


def _pe_add_2d_kernel(x_ref, pe_ref, o_ref, *, reps):
    # x/o: [ts, tc] with tc == reps * D; pe: [ts, D].  pe is tiled across the batch
    # inside the kernel, so HBM pe traffic stays S*D bytes total (not x-sized).
    o_ref[...] = x_ref[...] + jnp.tile(pe_ref[...], (1, reps))


def _seq_tile(S: int, row_bytes: int, total_bytes: int) -> int:
    """Row tile: fits ~_TARGET_TILE_BYTES, multiple of 8 (pe second-minor dim),
    and small enough that big inputs produce >= _MIN_GRID_STEPS grid steps."""
    ts = max(1, _TARGET_TILE_BYTES // max(row_bytes, 1))
    if total_bytes > _SPLIT_THRESHOLD_BYTES:
        ts = min(ts, pl.cdiv(S, _MIN_GRID_STEPS))
    ts = min(ts, S)
    return max(8, (ts // 8) * 8)


def _vmem_limit(per_step_tile_bytes: int) -> int:
    # 2 buffers (double-buffering) of (x tile + out tile + pe tile) + headroom.
    need = 2 * per_step_tile_bytes + (8 << 20)
    return int(min(48 << 20, max(16 << 20, need)))


def positional_encoding_forward(x: jnp.ndarray, pe_table: jnp.ndarray) -> jnp.ndarray:
    """x: [seq_len, batch, d_model]. Returns x + pe[:seq_len] (eval-mode dropout)."""
    S, B, D = x.shape
    max_len, d_model = pe_table.shape
    assert d_model == D, "pe_table d_model mismatch"
    assert max_len >= S, "sequence longer than max_len"
    itemsize = x.dtype.itemsize
    total_bytes = S * B * D * itemsize

    # Table is expected pre-cast (built via make_positional_encoding_table(dtype=...));
    # only cast if the caller passed a mismatched-dtype table.
    pe = pe_table if pe_table.dtype == x.dtype else pe_table.astype(x.dtype)

    def _xla_add():
        # Fused XLA broadcast-add: beats a standalone pallas_call for tiny inputs
        # (fixed dispatch overhead, sub-128-lane masked stores) and is the safe
        # fallback for degenerate tilings that would overshoot scoped VMEM.
        return x + pe[:S][:, None, :]

    if total_bytes <= _SMALL_FAST_PATH_BYTES or S < 8:
        return _xla_add()

    if D >= 128 and B >= 8:
        # Dense 3-D path: (B, D) minor dims already lane/sublane dense.
        # Tile only over S; pe streams as a tiny [ts, D] tile windowed by the
        # index_map out of the full [max_len, D] table (no per-call slice).
        row_bytes = B * D * itemsize
        ts = _seq_tile(S, row_bytes, total_bytes)
        per_step = 2 * ts * row_bytes + ts * D * itemsize     # x + out + pe tiles
        if 2 * per_step > _MAX_LIVE_VMEM_BYTES:
            return _xla_add()
        grid = (pl.cdiv(S, ts),)
        return pl.pallas_call(
            _pe_add_3d_kernel,
            out_shape=jax.ShapeDtypeStruct((S, B, D), x.dtype),
            grid_spec=pltpu.PrefetchScalarGridSpec(
                num_scalar_prefetch=0,
                grid=grid,
                in_specs=[
                    pl.BlockSpec((ts, B, D), lambda i: (i, 0, 0)),
                    pl.BlockSpec((ts, D), lambda i: (i, 0)),     # [:S] window via index_map
                ],
                out_specs=pl.BlockSpec((ts, B, D), lambda i: (i, 0, 0)),
            ),
            compiler_params=pltpu.CompilerParams(
                dimension_semantics=("parallel",),
                vmem_limit_bytes=_vmem_limit(per_step),
            ),
        )(x, pe)

    # Lane-sparse minor dims (D < 128 or B < 8): flatten to a lane-dense 2-D add.
    # reshape(S, B*D) collapses contiguous minor dims -> free metadata change.
    C = B * D
    x2 = x.reshape(S, C)
    if C * 8 * itemsize <= _TARGET_TILE_BYTES:
        tc = C                                                   # full width (== array dim)
    else:
        # Column tiling: tc must be a multiple of D (so column blocks start on batch
        # boundaries for the in-kernel pe tile) and a multiple of 128 (lane rule).
        unit = (D * 128) // math.gcd(D, 128)                     # lcm(D, 128)
        budget_cols = _TARGET_TILE_BYTES // (8 * itemsize)       # budget charged per 8 rows
        if unit > budget_cols:
            return _xla_add()                                    # degenerate d_model
        tc = min(C, (budget_cols // unit) * unit)
    reps = tc // D
    row_bytes = tc * itemsize
    ts = _seq_tile(S, row_bytes, total_bytes)
    per_step = 2 * ts * row_bytes + ts * D * itemsize
    if 2 * per_step > _MAX_LIVE_VMEM_BYTES:
        return _xla_add()
    grid = (pl.cdiv(S, ts), pl.cdiv(C, tc))
    out2 = pl.pallas_call(
        functools.partial(_pe_add_2d_kernel, reps=reps),
        out_shape=jax.ShapeDtypeStruct((S, C), x.dtype),
        grid_spec=pltpu.PrefetchScalarGridSpec(
            num_scalar_prefetch=0,
            grid=grid,
            in_specs=[
                pl.BlockSpec((ts, tc), lambda i, j: (i, j)),
                pl.BlockSpec((ts, D), lambda i, j: (i, 0)),      # same pe tile for every j
            ],
            out_specs=pl.BlockSpec((ts, tc), lambda i, j: (i, j)),
        ),
        compiler_params=pltpu.CompilerParams(
            dimension_semantics=("parallel", "parallel"),
            vmem_limit_bytes=_vmem_limit(per_step),
        ),
    )(x2, pe)
    return out2.reshape(S, B, D)


if __name__ == "__main__":
    key = jax.random.PRNGKey(0)

    def reference(x, pe_table):
        return x + pe_table[: x.shape[0]][:, None, :]

    # Case 1: tiny module-spec shape -> small-input fast path (fused XLA add).
    d1 = 32
    pe1 = make_positional_encoding_table(d1, max_len=64)
    x1 = jax.random.normal(key, (8, 2, d1), dtype=jnp.float32)
    o1 = jax.block_until_ready(positional_encoding_forward(x1, pe1))
    assert o1.shape == x1.shape and o1.dtype == x1.dtype
    assert jnp.allclose(o1, reference(x1, pe1), atol=1e-6)

    # Case 2: d_model >= 128, batch >= 8 -> 3-D Pallas path
    # (grid over S with a partial last block; pe windowed out of the full table).
    d2 = 128
    pe2 = make_positional_encoding_table(d2, max_len=512)
    x2 = jax.random.normal(jax.random.PRNGKey(0), (100, 8, d2), dtype=jnp.float32)
    o2 = jax.block_until_ready(positional_encoding_forward(x2, pe2))
    assert o2.shape == x2.shape and o2.dtype == x2.dtype
    assert jnp.allclose(o2, reference(x2, pe2), atol=1e-6)

    # Case 3: batch < 8 -> lane-dense flattened 2-D Pallas path, pe tiled in-kernel.
    d3 = 256
    pe3 = make_positional_encoding_table(d3, max_len=512)
    x3 = jax.random.normal(jax.random.PRNGKey(0), (256, 2, d3), dtype=jnp.float32)
    o3 = jax.block_until_ready(positional_encoding_forward(x3, pe3))
    assert o3.shape == x3.shape and o3.dtype == x3.dtype
    assert jnp.allclose(o3, reference(x3, pe3), atol=1e-6)

    print("KERNEL_OK")
</pallas_src>

<mosaic_0001>
module attributes {stable_mosaic.version = 11 : i64} {
  func.func @_pe_add_3d_kernel(%arg0: i32, %arg1: memref<96x8x128xf32, #tpu.memory_space<vmem>>, %arg2: memref<96x128xf32, #tpu.memory_space<vmem>>, %arg3: memref<96x8x128xf32, #tpu.memory_space<vmem>>) attributes {dimension_semantics = [#tpu.dimension_semantics<parallel>], iteration_bounds = array<i64: 2>, scalar_prefetch = 0 : i64, scratch_operands = 0 : i64, tpu.core_type = #tpu.core_type<tc>, window_params = [{transform_indices = @transform_0, window_bounds = array<i64: 96, 8, 128>}, {transform_indices = @transform_1, window_bounds = array<i64: 96, 128>}, {transform_indices = @transform_2, window_bounds = array<i64: 96, 8, 128>}]} {
    %c0 = arith.constant 0 : index
    %c0_0 = arith.constant 0 : index
    %c0_1 = arith.constant 0 : index
    %0 = vector.load %arg1[%c0, %c0_0, %c0_1] : memref<96x8x128xf32, #tpu.memory_space<vmem>>, vector<96x8x128xf32>
    %c0_2 = arith.constant 0 : index
    %c0_3 = arith.constant 0 : index
    %1 = vector.load %arg2[%c0_2, %c0_3] : memref<96x128xf32, #tpu.memory_space<vmem>>, vector<96x128xf32>
    %2 = vector.shape_cast %1 : vector<96x128xf32> to vector<96x1x128xf32>
    %3 = vector.broadcast %2 : vector<96x1x128xf32> to vector<96x8x128xf32>
    %4 = arith.addf %0, %3 : vector<96x8x128xf32>
    %c0_4 = arith.constant 0 : index
    %c0_5 = arith.constant 0 : index
    %c0_6 = arith.constant 0 : index
    %5 = vector.load %arg3[%c0_4, %c0_5, %c0_6] : memref<96x8x128xf32, #tpu.memory_space<vmem>>, vector<96x8x128xf32>
    tpu.vector_store %arg3[%c0_4, %c0_5, %c0_6], %4 {strides = array<i32>} : memref<96x8x128xf32, #tpu.memory_space<vmem>>, vector<96x8x128xf32>,
    return
  }
  func.func @transform_0(%arg0: i32) -> (i32, i32, i32) {
    %c0_i32 = arith.constant 0 : i32
    %c0_i32_0 = arith.constant 0 : i32
    %c0_i32_1 = arith.constant 0 : i32
    return %arg0, %c0_i32, %c0_i32_0 : i32, i32, i32
  }
  func.func @transform_1(%arg0: i32) -> (i32, i32) {
    %c0_i32 = arith.constant 0 : i32
    %c0_i32_0 = arith.constant 0 : i32
    return %arg0, %c0_i32 : i32, i32
  }
  func.func @transform_2(%arg0: i32) -> (i32, i32, i32) {
    %c0_i32 = arith.constant 0 : i32
    %c0_i32_0 = arith.constant 0 : i32
    %c0_i32_1 = arith.constant 0 : i32
    return %arg0, %c0_i32, %c0_i32_0 : i32, i32, i32
  }
}

</mosaic_0001>

<bundles_post_ra>
// kernel: tpu_custom_call.1
= control target key start
LH: loop header
LB: loop body
LE: loop exit
PB: predicated region body
PF: predicated region fallthrough
CT: control target
= control target key end

     0   :  { %7 = vsyncpa [#allocation3], 0  ;;  %s2616_s0 = inlined_call_operand.hbm [shape: f32[100,8,128], index: 0, kind: input, shape index: {}]   ;;  %s2617_s1 = inlined_call_operand.hbm [shape: f32[512,128], index: 1, kind: input, shape index: {}]   ;;  %s2618_s2 = inlined_call_operand.hbm [shape: f32[100,8,128], index: 2, kind: output, shape index: {}]  }
   0x1   :  { %9 = vsyncpa [#allocation3 + $0x1], 0 }
   0x2   :  { %10 = vsyncpa [#allocation6], 0 }
   0x3   :  { %12 = vsyncpa [#allocation6 + $0x1], 0 }
   0x4   :  { %13 = vsyncpa [#allocation4], 0 }
   0x5   :  { %15 = vsyncpa [#allocation4 + $0x1], 0  ;;  %s1965_s9 = smov 0   ;;  %s1967_s10 = smov 0  }
   0x6   :  { %s1969_s11 = smov 0   ;;  %s1971_s12 = smov 0  }
   0x7 LB: > { %s1986_s13 = sadd.s32 4294967295, %s1938_s12   ;;  %s1725_s14 = sadd.s32 4294967294, %s1938_s12   ;;  %s1938_s12 = sphi %s1971_s12, %s2630_s12   ;;  %s1934_s11 = sphi %s1969_s11, %s2629_s11   ;;  %s1930_s10 = sphi %s1967_s10, %s2628_s10   ;;  %s1926_s9 = sphi %s1965_s9, %s2627_s9  }
   0x8   : > { %s1990_s15 = sadd.s32 1, %s1938_s12   ;;  %s28_s16 = sadd.s32 1, %s1934_s11 }
   0x9   : > { %s25_s17 = ssub.s32 %s1938_s12, %s1990_s15  ;;  %p35_p0 = scmp.ne.s32.totalorder %s1934_s11, %s1930_s10 }
   0xa   : > { %p26_p1 = scmp.eq.s32.totalorder %s25_s17, 0  ;;  %p36_p2 = scmp.eq.s32.totalorder %s1938_s12, 0 }
   0xb   : > { %p41_p3 = scmp.ne.s32.totalorder %s1930_s10, %s1926_s9  ;;  %p42_p4 = scmp.eq.s32.totalorder %s1986_s13, 0 }
   0xc   : > { %s2002_s18 = scalar_select %p26_p1, %s1934_s11, %s28_s16  }
   0xd   : > { %p2004_p5 = por %p36_p2, %p35_p0  ;;  %p2008_p6 = por %p42_p4, %p41_p3 }
   0xe   : > { %p91_p7 = scmp.eq.s32.totalorder %s1986_s13, 1  ;;  %p97_p8 = scmp.eq.s32.totalorder %s1725_s14, 1 }
   0xf   : > { %p2619_p11 = scmp.ge.s32.totalorder %s1938_s12, 2 }
  0x10   : > { %p2013_p9 = por %p91_p7, %p35_p0  ;;  %p2017_p10 = por %p97_p8, %p41_p3 }
  0x11   : > { %113 = sbr.rel (%p2619_p11) target bundleno = 94 (0x5e), region = 16 }
  0x12   : > { %s2622_s21 = scalar_select %p2013_p9, 1, 0 }
  0x13   : > { %s2623_s22 = scalar_select %p2017_p10, 1, 0 }
  0x18   : > { %116 = sbr.rel (!%p2004_p5) target bundleno = 59 (0x3b), region = 20  ;;  %s117_s23 = sand.u32 (%p2004_p5), 1, %s1934_s11  }
  0x19   : > { %s122_s24 = smul.u32 (%p2004_p5), 96, %s1938_s12  ;;  %s2031_s29 = scalar_lea.sflag (%p2004_p5), [#allocation3], %s117_s23 }
  0x1a   : > { %s1749_s25 = smul.u32 (%p2004_p5), 768, %s117_s23 }
  0x1b   : > { %s123_s26 = ssub.s32 (%p2004_p5), 100, %s122_s24 }
  0x1c   : > { %p124_p12 = scmp.lt.s32.totalorder (%p2004_p5), %s123_s26, 96  ;;  %s121_s30 = scalar_lea.vmem (%p2004_p5), [#allocation2], %s1749_s25 }
  0x1f   : > { %s2632_s26 = smov (!%p124_p12, %s123_s26), 96 }
  0x20   : > { %s2028_s27 = sshll.u32 %s2632_s26, 7 }
  0x21   : > { %s128_s28 = ssub.s32 12288, %s2028_s27 }
  0x22   : > { %129 = vsyncadd %s2031_s29, %s128_s28  ;;  %p1729_p13 = scmp.ne.s32.totalorder %s2028_s27, 0  ;;  %s1746_s3 = smul.u32 12288, %s1938_s12 }
  0x23   : > { %s134_s4 = sshll.u32 %s121_s30, 4  ;;  %s1816_s17 = scalar_lea.hbm %s2616_s0, 12800  ;;  %s2041_s4 = int_to_ptr.vmem [resolvable:$true] %s134_s4 }
  0x24   : > { %s2039_s7 = scalar_lea.hbm %s2616_s0, %s1746_s3 }
  0x25   : > { %s1812_s8 = scalar_lea.hbm %s2039_s7, %s2028_s27  ;;  %p1817_p3 = scmp.lt.u32.totalorder %s2039_s7, %s2616_s0 }
  0x26   : > { %p1813_p0 = scmp.ne.s32.totalorder %s2039_s7, %s1812_s8  ;;  %p1818_p4 = scmp.lt.u32.totalorder %s1816_s17, %s1812_s8 }
  0x27   : > { %p1820_p8 = scmp.lt.u32.totalorder %s1812_s8, %s2039_s7 }
  0x28   : > { %p1814_p1 = pnand %p1813_p0, %p1729_p13  ;;  %p1819_p7 = por %p1818_p4, %p1817_p3 }
  0x2a   : > { %p1815_p2 = pneg %p1814_p1  ;;  %p1821_p12 = por %p1820_p8, %p1819_p7 }
  0x2c   : > { %p1822_p11 = pnand %p1821_p12, %p1815_p2 }
  0x2e   : > { %1825 = shalt.err (!%p1822_p11)
}
  0x2f   : > { %s1826_s25 = scalar_lea.vmem %s2041_s4, %s2028_s27  ;;  %s1940_s26 = smov [#allocation2]  }
  0x30   : > { %p1827_p0 = scmp.ne.s32.totalorder %s2041_s4, %s1826_s25  ;;  %s1830_s28 = sshll.u32 %s1940_s26, 4  ;;  %s1831_s28 = int_to_ptr.vmem [resolvable:$false] %s1830_s28 }
  0x31   : > { %s1832_s30 = scalar_lea.vmem %s1831_s28, 24576  ;;  %p1833_p9 = scmp.lt.s32.totalorder %s2041_s4, %s1831_s28 }
  0x32   : > { %p1828_p1 = pnand %p1827_p0, %p1729_p13  ;;  %p1834_p3 = scmp.lt.s32.totalorder %s1832_s30, %s1826_s25 }
  0x34   : > { %p1829_p10 = pneg %p1828_p1  ;;  %p1835_p4 = por %p1834_p3, %p1833_p9 }
  0x36   : > { %p1836_p7 = pnand %p1835_p4, %p1829_p10 }
  0x38   : > { %1839 = shalt.err (!%p1836_p7)
}
  0x39   : > { %s1941_s3 = smov 128   ;;  %s1942_s5 = smov 8  }
  0x3a   : > { %140 = dma.hbm_to_vmem [thread:$0]  (%p1729_p13), %s2039_s7, %s2028_s27, %s2041_s4, %s2031_s29, %s1941_s3, %s1941_s3, %s1942_s5  }
  0x3b PF: > { %143 = sbr.rel (!%p2004_p5) target bundleno = 94 (0x5e), region = 24  ;;  %s144_s6 = sand.u32 (%p2004_p5), 1, %s1934_s11  }
  0x3c   : > { %s149_s8 = smul.u32 (%p2004_p5), 12, %s1938_s12  ;;  %s2075_s24 = scalar_lea.sflag (%p2004_p5), [#allocation6], %s144_s6 }
  0x3d   : > { %s1750_s14 = smul.u32 (%p2004_p5), 96, %s144_s6 }
  0x3e   : > { %s150_s16 = ssub.s32 (%p2004_p5), 64, %s149_s8 }
  0x3f   : > { %p151_p9 = scmp.lt.s32.totalorder (%p2004_p5), %s150_s16, 12  ;;  %s148_s27 = scalar_lea.vmem (%p2004_p5), [#allocation5], %s1750_s14 }
  0x42   : > { %s2634_s16 = smov (!%p151_p9, %s150_s16), 12 }
  0x43   : > { %s2072_s17 = sshll.u32 %s2634_s16, 7 }
  0x44   : > { %s155_s23 = ssub.s32 1536, %s2072_s17 }
  0x45   : > { %156 = vsyncadd %s2075_s24, %s155_s23  ;;  %p1734_p5 = scmp.ne.s32.totalorder %s2072_s17, 0  ;;  %s1747_s19 = smul.u32 1536, %s1938_s12 }
  0x46   : > { %s161_s29 = sshll.u32 %s148_s27, 4  ;;  %s1844_s3 = scalar_lea.hbm %s2617_s1, 8192  ;;  %s2085_s29 = int_to_ptr.vmem [resolvable:$true] %s161_s29 }
  0x47   : > { %s2083_s25 = scalar_lea.hbm %s2617_s1, %s1747_s19 }
  0x48   : > { %s1840_s26 = scalar_lea.hbm %s2083_s25, %s2072_s17  ;;  %p1845_p2 = scmp.lt.u32.totalorder %s2083_s25, %s2617_s1 }
  0x49   : > { %p1841_p10 = scmp.ne.s32.totalorder %s2083_s25, %s1840_s26  ;;  %p1846_p8 = scmp.lt.u32.totalorder %s1844_s3, %s1840_s26 }
  0x4a   : > { %p1848_p0 = scmp.lt.u32.totalorder %s1840_s26, %s2083_s25 }
  0x4b   : > { %p1842_p11 = pnand %p1841_p10, %p1734_p5  ;;  %p1847_p12 = por %p1846_p8, %p1845_p2 }
  0x4d   : > { %p1843_p13 = pneg %p1842_p11  ;;  %p1849_p1 = por %p1848_p0, %p1847_p12 }
  0x4f   : > { %p1850_p3 = pnand %p1849_p1, %p1843_p13 }
  0x51   : > { %1853 = shalt.err (!%p1850_p3)
}
  0x52   : > { %s1854_s8 = scalar_lea.vmem %s2085_s29, %s2072_s17  ;;  %s1943_s14 = smov [#allocation5]  }
  0x53   : > { %p1855_p4 = scmp.ne.s32.totalorder %s2085_s29, %s1854_s8  ;;  %s1858_s16 = sshll.u32 %s1943_s14, 4  ;;  %s1859_s16 = int_to_ptr.vmem [resolvable:$false] %s1858_s16 }
  0x54   : > { %s1860_s23 = scalar_lea.vmem %s1859_s16, 3072  ;;  %p1861_p10 = scmp.lt.s32.totalorder %s2085_s29, %s1859_s16 }
  0x55   : > { %p1856_p7 = pnand %p1855_p4, %p1734_p5  ;;  %p1862_p11 = scmp.lt.s32.totalorder %s1860_s23, %s1854_s8 }
  0x57   : > { %p1857_p9 = pneg %p1856_p7  ;;  %p1863_p2 = por %p1862_p11, %p1861_p10 }
  0x59   : > { %p1864_p8 = pnand %p1863_p2, %p1857_p9 }
  0x5b   : > { %1867 = shalt.err (!%p1864_p8)
}
  0x5c   : > { %s1944_s27 = smov 128   ;;  %s1945_s19 = smov 8  }
  0x5d   : > { %167 = dma.hbm_to_vmem [thread:$0]  (%p1734_p5), %s2083_s25, %s2072_s17, %s2085_s29, %s2075_s24, %s1944_s27, %s1944_s27, %s1945_s19  }
  0x5e PF: > { %p1738_p13 = scmp.ge.s32.totalorder %s1938_s12, 1  ;;  %p169_p12 = scmp.lt.s32.totalorder %s1938_s12, 3 }
  0x60   : > { %p170_p0 = pnand %p1738_p13, %p169_p12 }
  0x61   : > { %s2115_s4 = sand.u32 (!%p170_p0), 1, %s1930_s10  }
  0x62   : > { %173 = sbr.rel (%p170_p0) target bundleno = 242 (0xf2), region = 28  ;;  %s176_s26 = scalar_lea.sflag (!%p170_p0), [#allocation3], %s2115_s4 }
  0x63   : > { %s1751_s7 = smul.u32 (!%p170_p0), 768, %s2115_s4 }
  0x65   : > { %s2121_s28 = scalar_lea.vmem (!%p170_p0), [#allocation2], %s1751_s7 }
  0x69   : > { %1913 = dma.done.wait (%p2008_p6), %s176_s26, 12288  }
  0x6a   : > { %1915 = vsyncadd (%p2008_p6), %s176_s26, 4294955008  ;;  %s1752_s17 = smul.u32 96, %s2115_s4  ;;  %s185_s24 = scalar_lea.sflag [#allocation6], %s2115_s4 }
  0x6c   : > { %s2129_s29 = scalar_lea.vmem [#allocation5], %s1752_s17 }
  0x6d   : > { %1917 = dma.done.wait (%p2008_p6), %s185_s24, 1536  }
  0x6e   : > { %1919 = vsyncadd (%p2008_p6), %s185_s24, 4294965760  ;;  %v353_v0 = vlaneseq  ;;  %v1946_v1 = vmov 1966171168   ;;  %v325_v6 = vld [vmem:[%s2129_s29] sm:$0xff]  ;;  %v326_v13 = vld [vmem:[%s2129_s29 + $0x8] sm:$0xff]  ;;  %s2163_s20 = scalar_lea.vmem [#allocation7], %s1751_s7 }
  0x6f   : > { %v351_v2 = vunpack.c.l.s4 %v1946_v1  ;;  %v349_v9 = vcombine.high %v325_v6, %v325_v6  ;;  %v229_v14 = vld [vmem:[%s2121_s28] sm:$0xff]  ;;  %v398_v16 = vcombine.high %v326_v13, %v326_v13  ;;  %v230_v21 = vld [vmem:[%s2121_s28 + $0x8] sm:$0xff]  ;;  %v231_v22 = vld [vmem:[%s2121_s28 + $0x10] sm:$0xff]  ;;  %s1610_s25 = scalar_lea.sflag [#allocation4], %s2115_s4  ;;  %p2624_p6 = scmp.ne.s32.totalorder %s2622_s21, 0 }
  0x70   : > { %v354_v3 = vshrl.u32 %v353_v0, 7  ;;  %v233_v31 = vld [vmem:[%s2121_s28 + $0x20] sm:$0xff]  ;;  %v232_v32 = vld [vmem:[%s2121_s28 + $0x18] sm:$0xff]  ;;  %v234_v41 = vld [vmem:[%s2121_s28 + $0x28] sm:$0xff]  ;;  %s1617_s30 = smul.u32 (%p2624_p6), 96, %s1986_s13 }
  0x71   : > { %v352_v4 = vunpack.c.0.s8 %v351_v2  ;;  %v237_v36 = vld [vmem:[%s2121_s28 + $0x40] sm:$0xff]  ;;  %v235_v42 = vld [vmem:[%s2121_s28 + $0x30] sm:$0xff]  ;;  %v238_v48 = vld [vmem:[%s2121_s28 + $0x48] sm:$0xff] }
  0x72   : > { %v2139_v8 = vsub.s32 0, %v354_v3  ;;  %v236_v50 = vld [vmem:[%s2121_s28 + $0x38] sm:$0xff]  ;;  %v327_v54 = vld [vmem:[%s2129_s29 + $0x10] sm:$0xff]  ;;  %s1618_s3 = ssub.s32 (%p2624_p6), 100, %s1617_s30 }
  0x73   : > { %v2135_v5 = vsub.s32 %v352_v4, %v354_v3  ;;  %v239_v58 = vld [vmem:[%s2121_s28 + $0x50] sm:$0xff]  ;;  %v240_v62 = vld [vmem:[%s2121_s28 + $0x58] sm:$0xff]  ;;  %v241_v3 = vld [vmem:[%s2121_s28 + $0x60] sm:$0xff]  ;;  %p1619_p5 = scmp.lt.s32.totalorder (%p2624_p6), %s1618_s3, 96 }
  0x75   : > { %v356_v7 = vrot.slane %v325_v6, %v2135_v5  ;;  %v363_v12 = vrot.slane %v349_v9, %v2135_v5  ;;  %v405_v15 = vrot.slane %v326_v13, %v2135_v5  ;;  %v412_v26 = vrot.slane %v398_v16, %v2135_v5  ;;  %v242_v13 = vld [vmem:[%s2121_s28 + $0x68] sm:$0xff] }
  0x76   : > { %v454_v4 = vrot.slane %v327_v54, %v2135_v5  ;;  %v447_v6 = vcombine.high %v327_v54, %v327_v54 }
  0x77   : > { %v372_v10 = vrot.slane %v356_v7, %v2135_v5  ;;  %v364_v11 = vcombine.high %v356_v7, %v356_v7  ;;  %v379_v20 = vrot.slane %v363_v12, %v2135_v5  ;;  %v365_v23 = vcombine.high %v363_v12, %v363_v12 }
  0x78   : > { %v421_v24 = vrot.slane %v405_v15, %v2135_v5  ;;  %v413_v25 = vcombine.high %v405_v15, %v405_v15  ;;  %v428_v63 = vrot.slane %v412_v26, %v2135_v5  ;;  %v414_v0 = vcombine.high %v412_v26, %v412_v26 }
  0x79   : > { %v940_v17 = vrot.slane %v372_v10, %v2139_v8  ;;  %v386_v18 = vrot.slane %v364_v11, %v2135_v5  ;;  %v394_v19 = vcombine.high %v372_v10, %v372_v10  ;;  %v956_v33 = vrot.slane %v379_v20, %v2139_v8 }
  0x7a   : > { %v393_v34 = vrot.slane %v365_v23, %v2135_v5  ;;  %v395_v35 = vcombine.high %v379_v20, %v379_v20  ;;  %v972_v37 = vrot.slane %v421_v24, %v2139_v8  ;;  %v435_v43 = vrot.slane %v413_v25, %v2135_v5  ;;  %v244_v23 = vld [vmem:[%s2121_s28 + $0x78] sm:$0xff] }
  0x7b   : > { %v1417_v27 = vadd.f32 %v940_v17, %v229_v14  ;;  %v944_v28 = vrot.slane %v386_v18, %v2139_v8  ;;  %v948_v29 = vrot.slane %v394_v19, %v2139_v8  ;;  %v396_v30 = vcombine.high %v386_v18, %v386_v18  ;;  %v243_v14 = vld [vmem:[%s2121_s28 + $0x70] sm:$0xff] }
  0x7c   : > { %v1421_v44 = vadd.f32 %v956_v33, %v233_v31  ;;  %v960_v45 = vrot.slane %v393_v34, %v2139_v8  ;;  %v964_v46 = vrot.slane %v395_v35, %v2139_v8  ;;  %v397_v47 = vcombine.high %v393_v34, %v393_v34  ;;  %v246_v31 = vld [vmem:[%s2121_s28 + $0x88] sm:$0xff] }
  0x7d   : > { %1513 = vst [vmem:[%s2163_s20] sm:$0xff] %v1417_v27  ;;  %v1418_v38 = vadd.f32 %v944_v28, %v230_v21  ;;  %v1419_v39 = vadd.f32 %v948_v29, %v231_v22  ;;  %v952_v40 = vrot.slane %v396_v30, %v2139_v8  ;;  %v1425_v51 = vadd.f32 %v972_v37, %v237_v36  ;;  %v245_v22 = vld [vmem:[%s2121_s28 + $0x80] sm:$0xff] }
  0x7e   : > { %v976_v52 = vrot.slane %v435_v43, %v2139_v8  ;;  %v443_v53 = vcombine.high %v421_v24, %v421_v24  ;;  %1517 = vst [vmem:[%s2163_s20 + $0x20] sm:$0xff] %v1421_v44  ;;  %v1422_v55 = vadd.f32 %v960_v45, %v234_v41  ;;  %v1423_v56 = vadd.f32 %v964_v46, %v235_v42  ;;  %v328_v44 = vld [vmem:[%s2129_s29 + $0x18] sm:$0xff] }
  0x7f   : > { %1514 = vst [vmem:[%s2163_s20 + $0x8] sm:$0xff] %v1418_v38  ;;  %1515 = vst [vmem:[%s2163_s20 + $0x10] sm:$0xff] %v1419_v39  ;;  %v1420_v49 = vadd.f32 %v952_v40, %v232_v32  ;;  %v968_v57 = vrot.slane %v397_v47, %v2139_v8  ;;  %v445_v59 = vcombine.high %v435_v43, %v435_v43  ;;  %v247_v32 = vld [vmem:[%s2121_s28 + $0x90] sm:$0xff]  ;;  %v249_v38 = vld [vmem:[%s2121_s28 + $0xa0] sm:$0xff] }
  0x80   : > { %1521 = vst [vmem:[%s2163_s20 + $0x40] sm:$0xff] %v1425_v51  ;;  %v1426_v60 = vadd.f32 %v976_v52, %v238_v48  ;;  %v980_v61 = vrot.slane %v443_v53, %v2139_v8  ;;  %1518 = vst [vmem:[%s2163_s20 + $0x28] sm:$0xff] %v1422_v55  ;;  %v988_v9 = vrot.slane %v428_v63, %v2139_v8  ;;  %v248_v40 = vld [vmem:[%s2121_s28 + $0x98] sm:$0xff]  ;;  %v250_v48 = vld [vmem:[%s2121_s28 + $0xa8] sm:$0xff] }
  0x81   : > { %1516 = vst [vmem:[%s2163_s20 + $0x18] sm:$0xff] %v1420_v49  ;;  %1519 = vst [vmem:[%s2163_s20 + $0x30] sm:$0xff] %v1423_v56  ;;  %v1424_v1 = vadd.f32 %v968_v57, %v236_v50  ;;  %v984_v2 = vrot.slane %v445_v59, %v2139_v8  ;;  %v442_v10 = vrot.slane %v414_v0, %v2135_v5  ;;  %v251_v49 = vld [vmem:[%s2121_s28 + $0xb0] sm:$0xff]  ;;  %v252_v56 = vld [vmem:[%s2121_s28 + $0xb8] sm:$0xff] }
  0x82   : > { %1522 = vst [vmem:[%s2163_s20 + $0x48] sm:$0xff] %v1426_v60  ;;  %v1427_v7 = vadd.f32 %v980_v61, %v239_v58  ;;  %v444_v11 = vcombine.high %v428_v63, %v428_v63  ;;  %v470_v15 = vrot.slane %v454_v4, %v2135_v5  ;;  %v462_v16 = vcombine.high %v454_v4, %v454_v4  ;;  %v2234_v60 = vld [vmem:[%s2129_s29 + $0x20] sm:$0xff] }
  0x83   : > { %1520 = vst [vmem:[%s2163_s20 + $0x38] sm:$0xff] %v1424_v1  ;;  %v1428_v12 = vadd.f32 %v984_v2, %v240_v62  ;;  %v461_v17 = vrot.slane %v447_v6, %v2135_v5  ;;  %v1429_v18 = vadd.f32 %v988_v9, %v241_v3  ;;  %v992_v19 = vrot.slane %v442_v10, %v2139_v8  ;;  %v253_v0 = vld [vmem:[%s2121_s28 + $0xc0] sm:$0xff]  ;;  %v254_v9 = vld [vmem:[%s2121_s28 + $0xc8] sm:$0xff] }
  0x84   : > { %1523 = vst [vmem:[%s2163_s20 + $0x50] sm:$0xff] %v1427_v7  ;;  %v996_v20 = vrot.slane %v444_v11, %v2139_v8  ;;  %v446_v21 = vcombine.high %v442_v10, %v442_v10  ;;  %v1004_v24 = vrot.slane %v470_v15, %v2139_v8  ;;  %v484_v25 = vrot.slane %v462_v16, %v2135_v5  ;;  %v255_v10 = vld [vmem:[%s2121_s28 + $0xd0] sm:$0xff] }
  0x85   : > { %1524 = vst [vmem:[%s2163_s20 + $0x58] sm:$0xff] %v1428_v12  ;;  %v492_v26 = vcombine.high %v470_v15, %v470_v15  ;;  %v477_v27 = vrot.slane %v461_v17, %v2135_v5  ;;  %1525 = vst [vmem:[%s2163_s20 + $0x60] sm:$0xff] %v1429_v18  ;;  %v1430_v28 = vadd.f32 %v992_v19, %v242_v13  ;;  %v261_v18 = vld [vmem:[%s2121_s28 + $0x100] sm:$0xff]  ;;  %v256_v19 = vld [vmem:[%s2121_s28 + $0xd8] sm:$0xff] }
  0x86   : > { %v1431_v29 = vadd.f32 %v996_v20, %v243_v14  ;;  %v1000_v30 = vrot.slane %v446_v21, %v2139_v8  ;;  %v463_v33 = vcombine.high %v461_v17, %v461_v17  ;;  %v1433_v34 = vadd.f32 %v1004_v24, %v245_v22 }
  0x87   : > { %v1008_v35 = vrot.slane %v484_v25, %v2139_v8  ;;  %v1012_v36 = vrot.slane %v492_v26, %v2139_v8  ;;  %v494_v37 = vcombine.high %v484_v25, %v484_v25  ;;  %1526 = vst [vmem:[%s2163_s20 + $0x68] sm:$0xff] %v1430_v28  ;;  %v1020_v41 = vrot.slane %v477_v27, %v2139_v8 }
  0x88   : > { %1527 = vst [vmem:[%s2163_s20 + $0x70] sm:$0xff] %v1431_v29  ;;  %v1432_v39 = vadd.f32 %v1000_v30, %v244_v23  ;;  %v491_v42 = vrot.slane %v463_v33, %v2135_v5  ;;  %v493_v43 = vcombine.high %v477_v27, %v477_v27  ;;  %1529 = vst [vmem:[%s2163_s20 + $0x80] sm:$0xff] %v1433_v34  ;;  %v257_v27 = vld [vmem:[%s2121_s28 + $0xe0] sm:$0xff]  ;;  %v262_v33 = vld [vmem:[%s2121_s28 + $0x108] sm:$0xff] }
  0x89   : > { %v1434_v45 = vadd.f32 %v1008_v35, %v246_v31  ;;  %v1435_v46 = vadd.f32 %v1012_v36, %v247_v32  ;;  %v1016_v47 = vrot.slane %v494_v37, %v2139_v8  ;;  %v503_v50 = vrot.slane %v328_v44, %v2135_v5  ;;  %v263_v34 = vld [vmem:[%s2121_s28 + $0x110] sm:$0xff]  ;;  %v258_v36 = vld [vmem:[%s2121_s28 + $0xe8] sm:$0xff] }
  0x8a   : > { %1528 = vst [vmem:[%s2163_s20 + $0x78] sm:$0xff] %v1432_v39  ;;  %v1437_v51 = vadd.f32 %v1020_v41, %v249_v38  ;;  %v1024_v52 = vrot.slane %v491_v42, %v2139_v8  ;;  %v1028_v53 = vrot.slane %v493_v43, %v2139_v8  ;;  %v495_v54 = vcombine.high %v491_v42, %v491_v42  ;;  %v259_v37 = vld [vmem:[%s2121_s28 + $0xf0] sm:$0xff] }
  0x8b   : > { %1530 = vst [vmem:[%s2163_s20 + $0x88] sm:$0xff] %v1434_v45  ;;  %1531 = vst [vmem:[%s2163_s20 + $0x90] sm:$0xff] %v1435_v46  ;;  %v1436_v55 = vadd.f32 %v1016_v47, %v248_v40  ;;  %v519_v57 = vrot.slane %v503_v50, %v2135_v5  ;;  %v511_v58 = vcombine.high %v503_v50, %v503_v50  ;;  %v264_v45 = vld [vmem:[%s2121_s28 + $0x118] sm:$0xff]  ;;  %v330_v46 = vld [vmem:[%s2129_s29 + $0x28] sm:$0xff] }
  0x8c   : > { %v496_v59 = vcombine.high %v328_v44, %v328_v44  ;;  %1533 = vst [vmem:[%s2163_s20 + $0xa0] sm:$0xff] %v1437_v51  ;;  %v1438_v61 = vadd.f32 %v1024_v52, %v250_v48  ;;  %v1439_v62 = vadd.f32 %v1028_v53, %v251_v49  ;;  %v1032_v63 = vrot.slane %v495_v54, %v2139_v8  ;;  %v260_v47 = vld [vmem:[%s2121_s28 + $0xf8] sm:$0xff] }
  0x8d   : > { %v552_v1 = vrot.slane %v2234_v60, %v2135_v5  ;;  %1532 = vst [vmem:[%s2163_s20 + $0x98] sm:$0xff] %v1436_v55  ;;  %v1036_v2 = vrot.slane %v519_v57, %v2139_v8  ;;  %v533_v3 = vrot.slane %v511_v58, %v2135_v5  ;;  %v541_v4 = vcombine.high %v519_v57, %v519_v57 }
  0x8e   : > { %v510_v6 = vrot.slane %v496_v59, %v2135_v5  ;;  %1534 = vst [vmem:[%s2163_s20 + $0xa8] sm:$0xff] %v1438_v61  ;;  %1535 = vst [vmem:[%s2163_s20 + $0xb0] sm:$0xff] %v1439_v62  ;;  %v1440_v7 = vadd.f32 %v1032_v63, %v252_v56  ;;  %v545_v13 = vcombine.high %v2234_v60, %v2234_v60  ;;  %v2289_v60 = vld [vmem:[%s2129_s29 + $0x30] sm:$0xff]  ;;  %v265_v62 = vld [vmem:[%s2121_s28 + $0x120] sm:$0xff] }
  0x8f   : > { %v568_v11 = vrot.slane %v552_v1, %v2135_v5  ;;  %v560_v12 = vcombine.high %v552_v1, %v552_v1  ;;  %v1441_v14 = vadd.f32 %v1036_v2, %v253_v0  ;;  %v1040_v15 = vrot.slane %v533_v3, %v2139_v8 }
  0x90   : > { %v1044_v16 = vrot.slane %v541_v4, %v2139_v8  ;;  %v543_v17 = vcombine.high %v533_v3, %v533_v3  ;;  %1536 = vst [vmem:[%s2163_s20 + $0xb8] sm:$0xff] %v1440_v7  ;;  %v526_v20 = vrot.slane %v510_v6, %v2135_v5  ;;  %v512_v21 = vcombine.high %v510_v6, %v510_v6  ;;  %v269_v6 = vld [vmem:[%s2121_s28 + $0x140] sm:$0xff] }
  0x91   : > { %v1068_v22 = vrot.slane %v568_v11, %v2139_v8  ;;  %v582_v23 = vrot.slane %v560_v12, %v2135_v5  ;;  %1537 = vst [vmem:[%s2163_s20 + $0xc0] sm:$0xff] %v1441_v14  ;;  %v1442_v24 = vadd.f32 %v1040_v15, %v254_v9  ;;  %v590_v28 = vcombine.high %v568_v11, %v568_v11  ;;  %v266_v9 = vld [vmem:[%s2121_s28 + $0x128] sm:$0xff] }
  0x92   : > { %v1443_v25 = vadd.f32 %v1044_v16, %v255_v10  ;;  %v1048_v26 = vrot.slane %v543_v17, %v2139_v8  ;;  %v1052_v29 = vrot.slane %v526_v20, %v2139_v8  ;;  %v540_v30 = vrot.slane %v512_v21, %v2135_v5  ;;  %v267_v10 = vld [vmem:[%s2121_s28 + $0x130] sm:$0xff]  ;;  %v268_v21 = vld [vmem:[%s2121_s28 + $0x138] sm:$0xff] }
  0x93   : > { %v542_v31 = vcombine.high %v526_v20, %v526_v20  ;;  %v1449_v32 = vadd.f32 %v1068_v22, %v261_v18  ;;  %1538 = vst [vmem:[%s2163_s20 + $0xc8] sm:$0xff] %v1442_v24  ;;  %v1072_v38 = vrot.slane %v582_v23, %v2139_v8  ;;  %v1076_v39 = vrot.slane %v590_v28, %v2139_v8  ;;  %v271_v20 = vld [vmem:[%s2121_s28 + $0x150] sm:$0xff] }
  0x94   : > { %1539 = vst [vmem:[%s2163_s20 + $0xd0] sm:$0xff] %v1443_v25  ;;  %v1444_v35 = vadd.f32 %v1048_v26, %v256_v19  ;;  %v592_v40 = vcombine.high %v582_v23, %v582_v23  ;;  %v1445_v41 = vadd.f32 %v1052_v29, %v257_v27  ;;  %v1056_v42 = vrot.slane %v540_v30, %v2139_v8  ;;  %v270_v19 = vld [vmem:[%s2121_s28 + $0x148] sm:$0xff]  ;;  %v272_v29 = vld [vmem:[%s2121_s28 + $0x158] sm:$0xff] }
  0x95   : > { %v1060_v43 = vrot.slane %v542_v31, %v2139_v8  ;;  %v544_v44 = vcombine.high %v540_v30, %v540_v30  ;;  %1545 = vst [vmem:[%s2163_s20 + $0x100] sm:$0xff] %v1449_v32  ;;  %v1450_v48 = vadd.f32 %v1072_v38, %v262_v33  ;;  %v1451_v49 = vadd.f32 %v1076_v39, %v263_v34  ;;  %v273_v34 = vld [vmem:[%s2121_s28 + $0x160] sm:$0xff] }
  0x96   : > { %1540 = vst [vmem:[%s2163_s20 + $0xd8] sm:$0xff] %v1444_v35  ;;  %v1080_v50 = vrot.slane %v592_v40, %v2139_v8  ;;  %v559_v51 = vrot.slane %v545_v13, %v2135_v5  ;;  %1541 = vst [vmem:[%s2163_s20 + $0xe0] sm:$0xff] %v1445_v41  ;;  %v1446_v52 = vadd.f32 %v1056_v42, %v258_v36  ;;  %v277_v36 = vld [vmem:[%s2121_s28 + $0x180] sm:$0xff] }
  0x97   : > { %v1447_v53 = vadd.f32 %v1060_v43, %v259_v37  ;;  %v1064_v54 = vrot.slane %v544_v44, %v2139_v8  ;;  %v601_v55 = vrot.slane %v330_v46, %v2135_v5  ;;  %1546 = vst [vmem:[%s2163_s20 + $0x108] sm:$0xff] %v1450_v48  ;;  %1547 = vst [vmem:[%s2163_s20 + $0x110] sm:$0xff] %v1451_v49  ;;  %v275_v43 = vld [vmem:[%s2121_s28 + $0x170] sm:$0xff]  ;;  %v274_v48 = vld [vmem:[%s2121_s28 + $0x168] sm:$0xff] }
  0x98   : > { %v1452_v56 = vadd.f32 %v1080_v50, %v264_v45  ;;  %v575_v57 = vrot.slane %v559_v51, %v2135_v5  ;;  %v561_v58 = vcombine.high %v559_v51, %v559_v51  ;;  %v594_v59 = vcombine.high %v330_v46, %v330_v46  ;;  %1542 = vst [vmem:[%s2163_s20 + $0xe8] sm:$0xff] %v1446_v52  ;;  %v332_v46 = vld [vmem:[%s2129_s29 + $0x38] sm:$0xff]  ;;  %v279_v51 = vld [vmem:[%s2121_s28 + $0x190] sm:$0xff] }
  0x99   : > { %1543 = vst [vmem:[%s2163_s20 + $0xf0] sm:$0xff] %v1447_v53  ;;  %v1448_v61 = vadd.f32 %v1064_v54, %v260_v47  ;;  %v617_v63 = vrot.slane %v601_v55, %v2135_v5  ;;  %v609_v0 = vcombine.high %v601_v55, %v601_v55  ;;  %v2297_v1 = vrot.slane %v2289_v60, %v2135_v5 }
  0x9a   : > { %1548 = vst [vmem:[%s2163_s20 + $0x118] sm:$0xff] %v1452_v56  ;;  %v1084_v2 = vrot.slane %v575_v57, %v2139_v8  ;;  %v589_v3 = vrot.slane %v561_v58, %v2135_v5  ;;  %v591_v4 = vcombine.high %v575_v57, %v575_v57  ;;  %v608_v7 = vrot.slane %v594_v59, %v2135_v5  ;;  %v276_v58 = vld [vmem:[%s2121_s28 + $0x178] sm:$0xff]  ;;  %v278_v59 = vld [vmem:[%s2121_s28 + $0x188] sm:$0xff] }
  0x9b   : > { %1544 = vst [vmem:[%s2163_s20 + $0xf8] sm:$0xff] %v1448_v61  ;;  %v1100_v11 = vrot.slane %v617_v63, %v2139_v8  ;;  %v631_v12 = vrot.slane %v609_v0, %v2135_v5  ;;  %v639_v13 = vcombine.high %v617_v63, %v617_v63  ;;  %v666_v14 = vrot.slane %v2297_v1, %v2135_v5 }
  0x9c   : > { %v1453_v15 = vadd.f32 %v1084_v2, %v265_v62  ;;  %v1088_v16 = vrot.slane %v589_v3, %v2139_v8  ;;  %v1092_v17 = vrot.slane %v591_v4, %v2139_v8  ;;  %v593_v18 = vcombine.high %v589_v3, %v589_v3 }
  0x9d   : > { %v1457_v22 = vadd.f32 %v1100_v11, %v269_v6  ;;  %v1104_v23 = vrot.slane %v631_v12, %v2139_v8  ;;  %v1108_v24 = vrot.slane %v639_v13, %v2139_v8  ;;  %v641_v25 = vcombine.high %v631_v12, %v631_v12  ;;  %v280_v11 = vld [vmem:[%s2121_s28 + $0x198] sm:$0xff]  ;;  %v281_v12 = vld [vmem:[%s2121_s28 + $0x1a0] sm:$0xff] }
  0x9e   : > { %1549 = vst [vmem:[%s2163_s20 + $0x120] sm:$0xff] %v1453_v15  ;;  %v1454_v26 = vadd.f32 %v1088_v16, %v266_v9  ;;  %v1455_v27 = vadd.f32 %v1092_v17, %v267_v10  ;;  %v1096_v28 = vrot.slane %v593_v18, %v2139_v8  ;;  %v624_v30 = vrot.slane %v608_v7, %v2135_v5 }
  0x9f   : > { %1553 = vst [vmem:[%s2163_s20 + $0x140] sm:$0xff] %v1457_v22  ;;  %v1458_v31 = vadd.f32 %v1104_v23, %v270_v19  ;;  %v1459_v32 = vadd.f32 %v1108_v24, %v271_v20  ;;  %v1112_v33 = vrot.slane %v641_v25, %v2139_v8  ;;  %v610_v35 = vcombine.high %v608_v7, %v608_v7  ;;  %v285_v19 = vld [vmem:[%s2121_s28 + $0x1c0] sm:$0xff]  ;;  %v282_v20 = vld [vmem:[%s2121_s28 + $0x1a8] sm:$0xff] }
  0xa0   : > { %1550 = vst [vmem:[%s2163_s20 + $0x128] sm:$0xff] %v1454_v26  ;;  %1551 = vst [vmem:[%s2163_s20 + $0x130] sm:$0xff] %v1455_v27  ;;  %v1456_v37 = vadd.f32 %v1096_v28, %v268_v21  ;;  %v1116_v38 = vrot.slane %v624_v30, %v2139_v8  ;;  %v640_v39 = vcombine.high %v624_v30, %v624_v30  ;;  %v283_v21 = vld [vmem:[%s2121_s28 + $0x1b0] sm:$0xff]  ;;  %v286_v30 = vld [vmem:[%s2121_s28 + $0x1c8] sm:$0xff] }
  0xa1   : > { %v1132_v40 = vrot.slane %v666_v14, %v2139_v8  ;;  %1554 = vst [vmem:[%s2163_s20 + $0x148] sm:$0xff] %v1458_v31  ;;  %1555 = vst [vmem:[%s2163_s20 + $0x150] sm:$0xff] %v1459_v32  ;;  %v1460_v41 = vadd.f32 %v1112_v33, %v272_v29  ;;  %v638_v42 = vrot.slane %v610_v35, %v2135_v5  ;;  %v287_v31 = vld [vmem:[%s2121_s28 + $0x1d0] sm:$0xff] }
  0xa2   : > { %v658_v44 = vcombine.high %v2297_v1, %v2297_v1  ;;  %v688_v45 = vcombine.high %v666_v14, %v666_v14  ;;  %1552 = vst [vmem:[%s2163_s20 + $0x138] sm:$0xff] %v1456_v37  ;;  %v1461_v47 = vadd.f32 %v1116_v38, %v273_v34  ;;  %v1124_v49 = vrot.slane %v640_v39, %v2139_v8  ;;  %v284_v39 = vld [vmem:[%s2121_s28 + $0x1b8] sm:$0xff] }
  0xa3   : > { %v1465_v50 = vadd.f32 %v1132_v40, %v277_v36  ;;  %v643_v52 = vcombine.high %v2289_v60, %v2289_v60  ;;  %1556 = vst [vmem:[%s2163_s20 + $0x158] sm:$0xff] %v1460_v41  ;;  %v1120_v53 = vrot.slane %v638_v42, %v2139_v8  ;;  %v642_v54 = vcombine.high %v638_v42, %v638_v42  ;;  %v289_v36 = vld [vmem:[%s2121_s28 + $0x1e0] sm:$0xff] }
  0xa4   : > { %v680_v55 = vrot.slane %v658_v44, %v2135_v5  ;;  %v1140_v56 = vrot.slane %v688_v45, %v2139_v8  ;;  %1557 = vst [vmem:[%s2163_s20 + $0x160] sm:$0xff] %v1461_v47  ;;  %v1463_v57 = vadd.f32 %v1124_v49, %v275_v43  ;;  %v699_v60 = vrot.slane %v332_v46, %v2135_v5  ;;  %v333_v42 = vld [vmem:[%s2129_s29 + $0x40] sm:$0xff] }
  0xa5   : > { %1561 = vst [vmem:[%s2163_s20 + $0x180] sm:$0xff] %v1465_v50  ;;  %v657_v61 = vrot.slane %v643_v52, %v2135_v5  ;;  %v692_v62 = vcombine.high %v332_v46, %v332_v46  ;;  %v1462_v63 = vadd.f32 %v1120_v53, %v274_v48  ;;  %v1128_v0 = vrot.slane %v642_v54, %v2139_v8  ;;  %v288_v46 = vld [vmem:[%s2121_s28 + $0x1d8] sm:$0xff]  ;;  %v2394_v52 = vld [vmem:[%s2129_s29 + $0x48] sm:$0xff] }
  0xa6   : > { %v1136_v1 = vrot.slane %v680_v55, %v2139_v8  ;;  %v1467_v2 = vadd.f32 %v1140_v56, %v279_v51  ;;  %1559 = vst [vmem:[%s2163_s20 + $0x170] sm:$0xff] %v1463_v57  ;;  %v690_v3 = vcombine.high %v680_v55, %v680_v55  ;;  %v715_v7 = vrot.slane %v699_v60, %v2135_v5  ;;  %v291_v55 = vld [vmem:[%s2121_s28 + $0x1f0] sm:$0xff] }
  0xa7   : > { %v673_v4 = vrot.slane %v657_v61, %v2135_v5  ;;  %v659_v6 = vcombine.high %v657_v61, %v657_v61  ;;  %1558 = vst [vmem:[%s2163_s20 + $0x168] sm:$0xff] %v1462_v63  ;;  %v1464_v9 = vadd.f32 %v1128_v0, %v276_v58  ;;  %v707_v13 = vcombine.high %v699_v60, %v699_v60 }
  0xa8   : > { %v1466_v10 = vadd.f32 %v1136_v1, %v278_v59  ;;  %1563 = vst [vmem:[%s2163_s20 + $0x190] sm:$0xff] %v1467_v2  ;;  %v706_v14 = vrot.slane %v692_v62, %v2135_v5  ;;  %v1144_v15 = vrot.slane %v690_v3, %v2139_v8  ;;  %v1164_v22 = vrot.slane %v715_v7, %v2139_v8  ;;  %v290_v59 = vld [vmem:[%s2121_s28 + $0x1e8] sm:$0xff]  ;;  %v293_v1 = vld [vmem:[%s2121_s28 + $0x200] sm:$0xff] }
  0xa9   : > { %v1148_v16 = vrot.slane %v673_v4, %v2139_v8  ;;  %v687_v17 = vrot.slane %v659_v6, %v2135_v5  ;;  %v689_v18 = vcombine.high %v673_v4, %v673_v4  ;;  %1560 = vst [vmem:[%s2163_s20 + $0x178] sm:$0xff] %v1464_v9  ;;  %v729_v23 = vrot.slane %v707_v13, %v2135_v5  ;;  %v292_v6 = vld [vmem:[%s2121_s28 + $0x1f8] sm:$0xff]  ;;  %v294_v13 = vld [vmem:[%s2121_s28 + $0x208] sm:$0xff] }
  0xaa   : > { %1562 = vst [vmem:[%s2163_s20 + $0x188] sm:$0xff] %v1466_v10  ;;  %v737_v24 = vcombine.high %v715_v7, %v715_v7  ;;  %v722_v25 = vrot.slane %v706_v14, %v2135_v5  ;;  %v1468_v26 = vadd.f32 %v1144_v15, %v280_v11  ;;  %v1473_v33 = vadd.f32 %v1164_v22, %v285_v19 }
  0xab   : > { %v1469_v27 = vadd.f32 %v1148_v16, %v281_v12  ;;  %v1152_v28 = vrot.slane %v687_v17, %v2139_v8  ;;  %v1156_v29 = vrot.slane %v689_v18, %v2139_v8  ;;  %v691_v32 = vcombine.high %v687_v17, %v687_v17 }
  0xac   : > { %v1168_v34 = vrot.slane %v729_v23, %v2139_v8  ;;  %v1172_v35 = vrot.slane %v737_v24, %v2139_v8  ;;  %1564 = vst [vmem:[%s2163_s20 + $0x198] sm:$0xff] %v1468_v26  ;;  %v739_v40 = vcombine.high %v729_v23, %v729_v23  ;;  %v1180_v41 = vrot.slane %v722_v25, %v2139_v8  ;;  %v296_v23 = vld [vmem:[%s2121_s28 + $0x218] sm:$0xff] }
  0xad   : > { %1565 = vst [vmem:[%s2163_s20 + $0x1a0] sm:$0xff] %v1469_v27  ;;  %v1470_v37 = vadd.f32 %v1152_v28, %v282_v20  ;;  %v1471_v38 = vadd.f32 %v1156_v29, %v283_v21  ;;  %v1160_v43 = vrot.slane %v691_v32, %v2139_v8  ;;  %1569 = vst [vmem:[%s2163_s20 + $0x1c0] sm:$0xff] %v1473_v33  ;;  %v297_v21 = vld [vmem:[%s2121_s28 + $0x220] sm:$0xff]  ;;  %v299_v32 = vld [vmem:[%s2121_s28 + $0x230] sm:$0xff] }
  0xae   : > { %v1474_v44 = vadd.f32 %v1168_v34, %v286_v30  ;;  %v1475_v45 = vadd.f32 %v1172_v35, %v287_v31  ;;  %v708_v47 = vcombine.high %v706_v14, %v706_v14  ;;  %v1176_v48 = vrot.slane %v739_v40, %v2139_v8  ;;  %v295_v14 = vld [vmem:[%s2121_s28 + $0x210] sm:$0xff]  ;;  %v301_v27 = vld [vmem:[%s2121_s28 + $0x240] sm:$0xff]  ;;  %v298_v31 = vld [vmem:[%s2121_s28 + $0x228] sm:$0xff] }
  0xaf   : > { %1566 = vst [vmem:[%s2163_s20 + $0x1a8] sm:$0xff] %v1470_v37  ;;  %1567 = vst [vmem:[%s2163_s20 + $0x1b0] sm:$0xff] %v1471_v38  ;;  %v1477_v49 = vadd.f32 %v1180_v41, %v289_v36  ;;  %v738_v50 = vcombine.high %v722_v25, %v722_v25  ;;  %v748_v51 = vrot.slane %v333_v42, %v2135_v5  ;;  %v335_v38 = vld [vmem:[%s2129_s29 + $0x50] sm:$0xff]  ;;  %v300_v40 = vld [vmem:[%s2121_s28 + $0x238] sm:$0xff] }
  0xb0   : > { %v1472_v53 = vadd.f32 %v1160_v43, %v284_v39  ;;  %1570 = vst [vmem:[%s2163_s20 + $0x1c8] sm:$0xff] %v1474_v44  ;;  %1571 = vst [vmem:[%s2163_s20 + $0x1d0] sm:$0xff] %v1475_v45  ;;  %v736_v54 = vrot.slane %v708_v47, %v2135_v5  ;;  %v741_v56 = vcombine.high %v333_v42, %v333_v42  ;;  %v2446_v44 = vld [vmem:[%s2129_s29 + $0x58] sm:$0xff] }
  0xb1   : > { %v2402_v57 = vrot.slane %v2394_v52, %v2135_v5  ;;  %v1476_v58 = vadd.f32 %v1176_v48, %v288_v46  ;;  %1573 = vst [vmem:[%s2163_s20 + $0x1e0] sm:$0xff] %v1477_v49  ;;  %v1188_v61 = vrot.slane %v738_v50, %v2139_v8  ;;  %v764_v60 = vrot.slane %v748_v51, %v2135_v5  ;;  %v303_v48 = vld [vmem:[%s2121_s28 + $0x250] sm:$0xff] }
  0xb2   : > { %v756_v62 = vcombine.high %v748_v51, %v748_v51  ;;  %1568 = vst [vmem:[%s2163_s20 + $0x1b8] sm:$0xff] %v1472_v53  ;;  %v1184_v63 = vrot.slane %v736_v54, %v2139_v8  ;;  %v740_v0 = vcombine.high %v736_v54, %v736_v54  ;;  %v755_v2 = vrot.slane %v741_v56, %v2135_v5  ;;  %v302_v56 = vld [vmem:[%s2121_s28 + $0x248] sm:$0xff] }
  0xb3   : > { %v813_v3 = vrot.slane %v2402_v57, %v2135_v5  ;;  %1572 = vst [vmem:[%s2163_s20 + $0x1d8] sm:$0xff] %v1476_v58  ;;  %v1479_v4 = vadd.f32 %v1188_v61, %v291_v55  ;;  %v1196_v7 = vrot.slane %v764_v60, %v2139_v8  ;;  %v786_v10 = vcombine.high %v764_v60, %v764_v60 }
  0xb4   : > { %v778_v9 = vrot.slane %v756_v62, %v2135_v5  ;;  %v1478_v11 = vadd.f32 %v1184_v63, %v290_v59  ;;  %v1192_v12 = vrot.slane %v740_v0, %v2139_v8  ;;  %v771_v15 = vrot.slane %v755_v2, %v2135_v5  ;;  %v304_v63 = vld [vmem:[%s2121_s28 + $0x258] sm:$0xff] }
  0xb5   : > { %v757_v16 = vcombine.high %v755_v2, %v755_v2  ;;  %1575 = vst [vmem:[%s2163_s20 + $0x1f0] sm:$0xff] %v1479_v4  ;;  %v1481_v17 = vadd.f32 %v1196_v7, %v293_v1  ;;  %v1204_v19 = vrot.slane %v786_v10, %v2139_v8  ;;  %v1228_v33 = vrot.slane %v813_v3, %v2139_v8  ;;  %v309_v2 = vld [vmem:[%s2121_s28 + $0x280] sm:$0xff] }
  0xb6   : > { %v1200_v18 = vrot.slane %v778_v9, %v2139_v8  ;;  %v788_v20 = vcombine.high %v778_v9, %v778_v9  ;;  %1574 = vst [vmem:[%s2163_s20 + $0x1e8] sm:$0xff] %v1478_v11  ;;  %v1480_v22 = vadd.f32 %v1192_v12, %v292_v6  ;;  %v1212_v24 = vrot.slane %v771_v15, %v2139_v8  ;;  %v305_v9 = vld [vmem:[%s2121_s28 + $0x260] sm:$0xff] }
  0xb7   : > { %v785_v25 = vrot.slane %v757_v16, %v2135_v5  ;;  %v787_v26 = vcombine.high %v771_v15, %v771_v15  ;;  %1577 = vst [vmem:[%s2163_s20 + $0x200] sm:$0xff] %v1481_v17  ;;  %v1483_v29 = vadd.f32 %v1204_v19, %v295_v14  ;;  %v1489_v41 = vadd.f32 %v1228_v33, %v301_v27  ;;  %v311_v16 = vld [vmem:[%s2121_s28 + $0x290] sm:$0xff]  ;;  %v310_v27 = vld [vmem:[%s2121_s28 + $0x288] sm:$0xff] }
  0xb8   : > { %v1482_v28 = vadd.f32 %v1200_v18, %v294_v13  ;;  %v1208_v30 = vrot.slane %v788_v20, %v2139_v8  ;;  %1576 = vst [vmem:[%s2163_s20 + $0x1f8] sm:$0xff] %v1480_v22  ;;  %v1485_v34 = vadd.f32 %v1212_v24, %v297_v21  ;;  %v805_v42 = vcombine.high %v2402_v57, %v2402_v57  ;;  %v306_v18 = vld [vmem:[%s2121_s28 + $0x268] sm:$0xff]  ;;  %v307_v19 = vld [vmem:[%s2121_s28 + $0x270] sm:$0xff] }
  0xb9   : > { %v1216_v35 = vrot.slane %v785_v25, %v2139_v8  ;;  %v1220_v36 = vrot.slane %v787_v26, %v2139_v8  ;;  %v789_v37 = vcombine.high %v785_v25, %v785_v25  ;;  %1579 = vst [vmem:[%s2163_s20 + $0x210] sm:$0xff] %v1483_v29  ;;  %v835_v43 = vcombine.high %v813_v3, %v813_v3  ;;  %v308_v29 = vld [vmem:[%s2121_s28 + $0x278] sm:$0xff] }
  0xba   : > { %1578 = vst [vmem:[%s2163_s20 + $0x208] sm:$0xff] %v1482_v28  ;;  %v1484_v39 = vadd.f32 %v1208_v30, %v296_v23  ;;  %1581 = vst [vmem:[%s2163_s20 + $0x220] sm:$0xff] %v1485_v34  ;;  %v790_v49 = vcombine.high %v2394_v52, %v2394_v52  ;;  %v827_v50 = vrot.slane %v805_v42, %v2135_v5  ;;  %v313_v28 = vld [vmem:[%s2121_s28 + $0x2a0] sm:$0xff] }
  0xbb   : > { %v1486_v45 = vadd.f32 %v1216_v35, %v298_v31  ;;  %v1487_v46 = vadd.f32 %v1220_v36, %v299_v32  ;;  %v1224_v47 = vrot.slane %v789_v37, %v2139_v8  ;;  %1585 = vst [vmem:[%s2163_s20 + $0x240] sm:$0xff] %v1489_v41  ;;  %v1236_v51 = vrot.slane %v835_v43, %v2139_v8  ;;  %v312_v37 = vld [vmem:[%s2121_s28 + $0x298] sm:$0xff] }
  0xbc   : > { %1580 = vst [vmem:[%s2163_s20 + $0x218] sm:$0xff] %v1484_v39  ;;  %v846_v53 = vrot.slane %v335_v38, %v2135_v5  ;;  %v839_v54 = vcombine.high %v335_v38, %v335_v38  ;;  %v804_v57 = vrot.slane %v790_v49, %v2135_v5  ;;  %v2464_v52 = vrot.slane %v2446_v44, %v2135_v5 }
  0xbd   : > { %1582 = vst [vmem:[%s2163_s20 + $0x228] sm:$0xff] %v1486_v45  ;;  %1583 = vst [vmem:[%s2163_s20 + $0x230] sm:$0xff] %v1487_v46  ;;  %v1488_v55 = vadd.f32 %v1224_v47, %v300_v40  ;;  %v888_v58 = vcombine.high %v2446_v44, %v2446_v44  ;;  %v1232_v59 = vrot.slane %v827_v50, %v2139_v8  ;;  %v315_v46 = vld [vmem:[%s2121_s28 + $0x2b0] sm:$0xff] }
  0xbe   : > { %v1491_v61 = vadd.f32 %v1236_v51, %v303_v48  ;;  %v837_v60 = vcombine.high %v827_v50, %v827_v50  ;;  %v862_v62 = vrot.slane %v846_v53, %v2135_v5  ;;  %v820_v0 = vrot.slane %v804_v57, %v2135_v5  ;;  %v314_v50 = vld [vmem:[%s2121_s28 + $0x2a8] sm:$0xff] }
  0xbf   : > { %1584 = vst [vmem:[%s2163_s20 + $0x238] sm:$0xff] %v1488_v55  ;;  %v806_v1 = vcombine.high %v804_v57, %v804_v57  ;;  %v854_v3 = vcombine.high %v846_v53, %v846_v53  ;;  %v853_v4 = vrot.slane %v839_v54, %v2135_v5  ;;  %v1490_v6 = vadd.f32 %v1232_v59, %v302_v56  ;;  %v317_v53 = vld [vmem:[%s2121_s28 + $0x2c0] sm:$0xff] }
  0xc0   : > { %1587 = vst [vmem:[%s2163_s20 + $0x250] sm:$0xff] %v1491_v61  ;;  %v1240_v7 = vrot.slane %v837_v60, %v2139_v8  ;;  %v1260_v10 = vrot.slane %v862_v62, %v2139_v8  ;;  %v884_v11 = vcombine.high %v862_v62, %v862_v62  ;;  %v1244_v12 = vrot.slane %v820_v0, %v2139_v8  ;;  %v316_v61 = vld [vmem:[%s2121_s28 + $0x2b8] sm:$0xff]  ;;  %v318_v60 = vld [vmem:[%s2121_s28 + $0x2c8] sm:$0xff] }
  0xc1   : > { %v834_v13 = vrot.slane %v806_v1, %v2135_v5  ;;  %v836_v14 = vcombine.high %v820_v0, %v820_v0  ;;  %v876_v15 = vrot.slane %v854_v3, %v2135_v5  ;;  %1586 = vst [vmem:[%s2163_s20 + $0x248] sm:$0xff] %v1490_v6  ;;  %v869_v22 = vrot.slane %v853_v4, %v2135_v5  ;;  %v319_v3 = vld [vmem:[%s2121_s28 + $0x2d0] sm:$0xff] }
  0xc2   : > { %v1492_v17 = vadd.f32 %v1240_v7, %v304_v63  ;;  %v1497_v20 = vadd.f32 %v1260_v10, %v309_v2  ;;  %v1268_v21 = vrot.slane %v884_v11, %v2139_v8  ;;  %v1493_v23 = vadd.f32 %v1244_v12, %v305_v9 }
  0xc3   : > { %v1248_v24 = vrot.slane %v834_v13, %v2139_v8  ;;  %v1252_v25 = vrot.slane %v836_v14, %v2139_v8  ;;  %v838_v26 = vcombine.high %v834_v13, %v834_v13  ;;  %v1264_v30 = vrot.slane %v876_v15, %v2139_v8  ;;  %v320_v13 = vld [vmem:[%s2121_s28 + $0x2d8] sm:$0xff]  ;;  %v322_v14 = vld [vmem:[%s2121_s28 + $0x2e8] sm:$0xff] }
  0xc4   : > { %1588 = vst [vmem:[%s2163_s20 + $0x258] sm:$0xff] %v1492_v17  ;;  %1593 = vst [vmem:[%s2163_s20 + $0x280] sm:$0xff] %v1497_v20  ;;  %v1499_v31 = vadd.f32 %v1268_v21, %v311_v16  ;;  %v886_v32 = vcombine.high %v876_v15, %v876_v15  ;;  %v1276_v33 = vrot.slane %v869_v22, %v2139_v8 }
  0xc5   : > { %1589 = vst [vmem:[%s2163_s20 + $0x260] sm:$0xff] %v1493_v23  ;;  %v1494_v34 = vadd.f32 %v1248_v24, %v306_v18  ;;  %v1495_v35 = vadd.f32 %v1252_v25, %v307_v19  ;;  %v1256_v36 = vrot.slane %v838_v26, %v2139_v8  ;;  %v855_v38 = vcombine.high %v853_v4, %v853_v4  ;;  %v321_v4 = vld [vmem:[%s2121_s28 + $0x2e0] sm:$0xff]  ;;  %v324_v24 = vld [vmem:[%s2121_s28 + $0x2f8] sm:$0xff] }
  0xc6   : > { %v1498_v39 = vadd.f32 %v1264_v30, %v310_v27  ;;  %1595 = vst [vmem:[%s2163_s20 + $0x290] sm:$0xff] %v1499_v31  ;;  %v1272_v40 = vrot.slane %v886_v32, %v2139_v8  ;;  %v1501_v41 = vadd.f32 %v1276_v33, %v313_v28  ;;  %v885_v42 = vcombine.high %v869_v22, %v869_v22 }
  0xc7   : > { %1590 = vst [vmem:[%s2163_s20 + $0x268] sm:$0xff] %v1494_v34  ;;  %1591 = vst [vmem:[%s2163_s20 + $0x270] sm:$0xff] %v1495_v35  ;;  %v1496_v43 = vadd.f32 %v1256_v36, %v308_v29  ;;  %v883_v45 = vrot.slane %v855_v38, %v2135_v5  ;;  %v911_v47 = vrot.slane %v2464_v52, %v2135_v5 }
  0xc8   : > { %v903_v48 = vcombine.high %v2464_v52, %v2464_v52  ;;  %1594 = vst [vmem:[%s2163_s20 + $0x288] sm:$0xff] %v1498_v39  ;;  %v1500_v49 = vadd.f32 %v1272_v40, %v312_v37  ;;  %1597 = vst [vmem:[%s2163_s20 + $0x2a0] sm:$0xff] %v1501_v41  ;;  %v1284_v51 = vrot.slane %v885_v42, %v2139_v8 }
  0xc9   : > { %v902_v54 = vrot.slane %v888_v58, %v2135_v5  ;;  %1592 = vst [vmem:[%s2163_s20 + $0x278] sm:$0xff] %v1496_v43  ;;  %v1280_v55 = vrot.slane %v883_v45, %v2139_v8  ;;  %v887_v56 = vcombine.high %v883_v45, %v883_v45  ;;  %v1292_v57 = vrot.slane %v911_v47, %v2139_v8 }
  0xca   : > { %v925_v52 = vrot.slane %v903_v48, %v2135_v5  ;;  %1596 = vst [vmem:[%s2163_s20 + $0x298] sm:$0xff] %v1500_v49  ;;  %v1503_v59 = vadd.f32 %v1284_v51, %v315_v46  ;;  %v933_v62 = vcombine.high %v911_v47, %v911_v47 }
  0xcb   : > { %v918_v44 = vrot.slane %v902_v54, %v2135_v5  ;;  %v904_v58 = vcombine.high %v902_v54, %v902_v54  ;;  %v1502_v63 = vadd.f32 %v1280_v55, %v314_v50  ;;  %v1288_v0 = vrot.slane %v887_v56, %v2139_v8 }
  0xcc   : > { %v1505_v1 = vadd.f32 %v1292_v57, %v317_v53  ;;  %v1296_v2 = vrot.slane %v925_v52, %v2139_v8  ;;  %1599 = vst [vmem:[%s2163_s20 + $0x2b0] sm:$0xff] %v1503_v59  ;;  %v1300_v6 = vrot.slane %v933_v62, %v2139_v8  ;;  %v935_v7 = vcombine.high %v925_v52, %v925_v52 }
  0xcd   : > { %v1308_v9 = vrot.slane %v918_v44, %v2139_v8  ;;  %v932_v10 = vrot.slane %v904_v58, %v2135_v5  ;;  %1598 = vst [vmem:[%s2163_s20 + $0x2a8] sm:$0xff] %v1502_v63  ;;  %v1504_v11 = vadd.f32 %v1288_v0, %v316_v61  ;;  %v934_v15 = vcombine.high %v918_v44, %v918_v44  ;;  %v323_v5 = vld [vmem:[%s2121_s28 + $0x2f0] sm:$0xff] }
  0xce   : > { %1601 = vst [vmem:[%s2163_s20 + $0x2c0] sm:$0xff] %v1505_v1  ;;  %v1506_v12 = vadd.f32 %v1296_v2, %v318_v60  ;;  %v1507_v16 = vadd.f32 %v1300_v6, %v319_v3  ;;  %v1304_v17 = vrot.slane %v935_v7, %v2139_v8 }
  0xcf   : > { %v1509_v18 = vadd.f32 %v1308_v9, %v321_v4  ;;  %v1312_v19 = vrot.slane %v932_v10, %v2139_v8  ;;  %1600 = vst [vmem:[%s2163_s20 + $0x2b8] sm:$0xff] %v1504_v11  ;;  %v1316_v20 = vrot.slane %v934_v15, %v2139_v8  ;;  %v936_v21 = vcombine.high %v932_v10, %v932_v10  ;;  %1616 = sbr.rel (!%p2624_p6) target bundleno = 242 (0xf2), region = 40 }
  0xd0   : > { %1602 = vst [vmem:[%s2163_s20 + $0x2c8] sm:$0xff] %v1506_v12  ;;  %1603 = vst [vmem:[%s2163_s20 + $0x2d0] sm:$0xff] %v1507_v16  ;;  %v1508_v22 = vadd.f32 %v1304_v17, %v320_v13 }
  0xd1   : > { %1605 = vst [vmem:[%s2163_s20 + $0x2e0] sm:$0xff] %v1509_v18  ;;  %v1510_v23 = vadd.f32 %v1312_v19, %v322_v14  ;;  %v1511_v25 = vadd.f32 %v1316_v20, %v323_v5  ;;  %v1320_v26 = vrot.slane %v936_v21, %v2139_v8 }
  0xd2   : > { %1604 = vst [vmem:[%s2163_s20 + $0x2d8] sm:$0xff] %v1508_v22 }
  0xd3   : > { %1606 = vst [vmem:[%s2163_s20 + $0x2e8] sm:$0xff] %v1510_v23  ;;  %1607 = vst [vmem:[%s2163_s20 + $0x2f0] sm:$0xff] %v1511_v25  ;;  %v1512_v27 = vadd.f32 %v1320_v26, %v324_v24 }
  0xd5   : > { %1608 = vst [vmem:[%s2163_s20 + $0x2f8] sm:$0xff] %v1512_v27 }
  0xd6   : > { %s2636_s3 = smov (!%p1619_p5, %s1618_s3), 96 }
  0xd7   : > { %s2557_s5 = sshll.u32 %s2636_s3, 7 }
  0xd8   : > { %s1623_s6 = ssub.s32 12288, %s2557_s5 }
  0xd9   : > { %1624 = vsyncadd %s1610_s25, %s1623_s6  ;;  %p1740_p1 = scmp.ne.s32.totalorder %s2557_s5, 0  ;;  %s1748_s21 = smul.u32 12288, %s1986_s13 }
  0xda   : > { %s1629_s8 = sshll.u32 %s2163_s20, 4  ;;  %s1947_s19 = smov [#allocation7]   ;;  %s2570_s8 = int_to_ptr.vmem [resolvable:$true] %s1629_s8 }
  0xdb   : > { %s2568_s23 = scalar_lea.hbm %s2618_s2, %s1748_s21  ;;  %s1868_s27 = scalar_lea.vmem %s2570_s8, %s2557_s5 }
  0xdc   : > { %p1869_p3 = scmp.ne.s32.totalorder %s2570_s8, %s1868_s27  ;;  %s1872_s7 = sshll.u32 %s1947_s19, 4  ;;  %s1873_s7 = int_to_ptr.vmem [resolvable:$false] %s1872_s7 }
  0xdd   : > { %s1874_s13 = scalar_lea.vmem %s1873_s7, 24576  ;;  %p1875_p9 = scmp.lt.s32.totalorder %s2570_s8, %s1873_s7 }
  0xde   : > { %p1870_p4 = pnand %p1869_p3, %p1740_p1  ;;  %p1876_p10 = scmp.lt.s32.totalorder %s1874_s13, %s1868_s27 }
  0xe0   : > { %p1871_p7 = pneg %p1870_p4  ;;  %p1877_p11 = por %p1876_p10, %p1875_p9 }
  0xe2   : > { %p1878_p2 = pnand %p1877_p11, %p1871_p7 }
  0xe4   : > { %1881 = shalt.err (!%p1878_p2)
}
  0xe5   : > { %s1882_s26 = scalar_lea.hbm %s2568_s23, %s2557_s5  ;;  %s1886_s24 = scalar_lea.hbm %s2618_s2, 12800 }
  0xe6   : > { %p1883_p8 = scmp.ne.s32.totalorder %s2568_s23, %s1882_s26  ;;  %p1887_p0 = scmp.lt.u32.totalorder %s2568_s23, %s2618_s2 }
  0xe7   : > { %p1888_p6 = scmp.lt.u32.totalorder %s1886_s24, %s1882_s26  ;;  %p1890_p3 = scmp.lt.u32.totalorder %s1882_s26, %s2568_s23 }
  0xe8   : > { %p1884_p13 = pnand %p1883_p8, %p1740_p1 }
  0xe9   : > { %p1889_p5 = por %p1888_p6, %p1887_p0 }
  0xea   : > { %p1885_p12 = pneg %p1884_p13 }
  0xeb   : > { %p1891_p4 = por %p1890_p3, %p1889_p5 }
  0xed   : > { %p1892_p7 = pnand %p1891_p4, %p1885_p12 }
  0xef   : > { %1895 = shalt.err (!%p1892_p7)
}
  0xf0   : > { %s1948_s30 = smov 128   ;;  %s1949_s3 = smov 8  }
  0xf1   : > { %1635 = dma.vmem_to_hbm [thread:$0]  (%p1740_p1), %s2570_s8, %s2557_s5, %s2568_s23, %s1610_s25, %s1948_s30, %s1948_s30, %s1949_s3  }
  0xf2 PF: > { %s1644_s6 = sand.u32 1, %s1926_s9   ;;  %p2625_p9 = scmp.ne.s32.totalorder %s2623_s22, 0 }
  0xf3   : > { %p2626_p10 = scmp.ge.s32.totalorder %s1938_s12, 2  ;;  %s1645_s21 = scalar_lea.sflag [#allocation4], %s1644_s6 }
  0xf5   : > { %p1757_p11 = pnand %p2626_p10, %p2625_p9 }
  0xf7   : > { %1921 = dma.done.wait (!%p1757_p11), %s1645_s21, 12288  }
  0xf8   : > { %1923 = vsyncadd (!%p1757_p11), %s1645_s21, 4294955008  ;;  %p18_p2 = scmp.ge.s32.totalorder %s1990_s15, 4   ;;  %s2627_s9 = smov %s1930_s10 }
  0xf9   : > { %s2628_s10 = smov %s1934_s11  ;;  %s2629_s11 = smov %s2002_s18 }
  0xfa   : > { %s2630_s12 = smov %s1990_s15  ;;  %20 = sbr.rel (!%p18_p2) target bundleno = 7 (0x7), region = 86 }
 0x101   :  { %1650 = vsyncpa [#allocation3], 1 }
 0x102   :  { %1652 = vsyncpa [#allocation3 + $0x1], 1 }
 0x103   :  { %1653 = vsyncpa [#allocation6], 1 }
 0x104   :  { %1655 = vsyncpa [#allocation6 + $0x1], 1 }
 0x105   :  { %1656 = vsyncpa [#allocation4], 1 }
 0x106   :  { %1658 = vsyncpa [#allocation4 + $0x1], 1 }

</bundles_post_ra>
